<compile_context>
chip_gen: v6e
topology: v6e:2x2x1
jax: 0.10.0
libtpu: 0.0.40
codegen_flags: <defaults>
</compile_context>

<pallas_src>
import jax
import jax.numpy as jnp
from jax.experimental import pallas as pl
from jax.experimental.pallas import tpu as pltpu

_NEG_BIG = -1e30  # bias value for padded vocab columns (exp underflows to 0)


# ------------------------------- kernels -----------------------------------

def _gen_full_vocab_kernel(x_ref, w_ref, b_ref, o_ref, acc_ref):
    """One (row_tile, k_tile) step of log_softmax(x @ W + b) with vocab resident."""
    k = pl.program_id(1)
    prod = jnp.dot(x_ref[...], w_ref[...], preferred_element_type=jnp.float32)

    @pl.when(k == 0)
    def _init():
        acc_ref[...] = prod

    @pl.when(k > 0)
    def _accum():
        acc_ref[...] += prod

    @pl.when(k == pl.num_programs(1) - 1)
    def _finalize():
        y = acc_ref[...] + b_ref[...].astype(jnp.float32)   # bias added once, here
        m = jnp.max(y, axis=-1, keepdims=True)               # XLU reduce
        e = jnp.exp(y - m)                                    # EUP
        lse = m + jnp.log(jnp.sum(e, axis=-1, keepdims=True))
        o_ref[...] = (y - lse).astype(o_ref.dtype)


def _gen_logits_lse_kernel(x_ref, w_ref, b_ref, logits_ref, lse_ref,
                           acc_ref, m_ref, l_ref):
    """Vocab-tiled pass 1: logits tile + online running max/sum -> per-row LSE."""
    j = pl.program_id(1)
    k = pl.program_id(2)
    nj = pl.num_programs(1)
    nk = pl.num_programs(2)

    @pl.when((j == 0) & (k == 0))
    def _init_stats():
        m_ref[...] = jnp.full_like(m_ref, -jnp.inf)
        l_ref[...] = jnp.zeros_like(l_ref)

    prod = jnp.dot(x_ref[...], w_ref[...], preferred_element_type=jnp.float32)

    @pl.when(k == 0)
    def _init_acc():
        acc_ref[...] = prod

    @pl.when(k > 0)
    def _accum():
        acc_ref[...] += prod

    @pl.when(k == nk - 1)
    def _finish_tile():
        y = acc_ref[...] + b_ref[...].astype(jnp.float32)
        logits_ref[...] = y
        t_max = jnp.max(y, axis=-1, keepdims=True)
        m_new = jnp.maximum(m_ref[...], t_max)
        l_ref[...] = (l_ref[...] * jnp.exp(m_ref[...] - m_new)
                      + jnp.sum(jnp.exp(y - m_new), axis=-1, keepdims=True))
        m_ref[...] = m_new

    @pl.when((j == nj - 1) & (k == nk - 1))
    def _write_lse():
        lse_ref[...] = m_ref[...] + jnp.log(l_ref[...])


def _gen_normalize_kernel(logits_ref, lse_ref, o_ref):
    """Vocab-tiled pass 2: log_softmax = logits - lse (streaming)."""
    o_ref[...] = (logits_ref[...] - lse_ref[...]).astype(o_ref.dtype)


# ----------------------------- index maps -----------------------------------

def _im_x_ik(i, k): return (i, k)
def _im_w_k0(i, k): return (k, 0)
def _im_b_00(i, k): return (0, 0)
def _im_out_i0(i, k): return (i, 0)

def _im3_x(i, j, k): return (i, k)
def _im3_w(i, j, k): return (k, j)
def _im3_b(i, j, k): return (0, j)
def _im3_logits(i, j, k): return (i, j)
def _im3_lse(i, j, k): return (i, 0)

def _im2_ij(i, j): return (i, j)
def _im2_i0(i, j): return (i, 0)


# ----------------------------- planning utils --------------------------------

def _round_up(n, m):
    return ((n + m - 1) // m) * m


def _vmem_budget_bytes():
    """(capacity, usable budget).  128 MiB -> ~112 MiB budget, 64 MiB -> ~56 MiB."""
    cap = 64 * 1024 * 1024  # conservative fallback (v7x per-core VMEM)
    try:
        info = pltpu.get_tpu_info()
        cap = int(getattr(info, "vmem_capacity_bytes", cap))
    except Exception:
        pass
    budget = cap - max(8 * 1024 * 1024, cap // 8)
    return cap, budget


def _k_tile_candidates(d_model):
    """Legal k-tiles: multiples of 128 that divide d_model, plus d_model itself."""
    cands = {d_model}
    t = 128
    while t < d_model:
        if d_model % t == 0:
            cands.add(t)
        t += 128
    return sorted(cands, reverse=True)          # largest first -> fewest k steps


def _plan_full_vocab(rows, d_model, vocab_p, x_it, w_it, b_it, out_it, budget,
                     max_k_tile=None):
    """Return (rows_tile, tk) for the full-vocab-resident layout, or None."""
    cands = _k_tile_candidates(d_model)
    if max_k_tile is not None:
        cands = [c for c in cands if c <= max_k_tile] or [min(cands)]
    weight_budget = budget // 3              # vocab-aware tk bound
    tk = None
    for c in cands:                          # prefer largest tk (least acc RMW traffic)
        if 2 * c * vocab_p * w_it <= weight_budget:
            tk = c
            break
    if tk is None:
        tk = cands[-1]
    fixed = 2 * tk * vocab_p * w_it + 2 * vocab_p * b_it
    per_row = 2 * tk * x_it + 2 * vocab_p * out_it + 4 * vocab_p   # x dbuf + out dbuf + f32 acc
    avail = budget - fixed
    if avail < 8 * per_row:
        return None
    rows_tile = min(avail // per_row, 1024, max(8, _round_up(rows, 8)))
    rows_tile = max(8, (rows_tile // 8) * 8)
    return rows_tile, tk


def _plan_vocab_tiled(rows, d_model, vocab_p, x_it, w_it, b_it, budget,
                      max_k_tile=None, max_vocab_tile=None):
    """Return (rows_tile, tk, tv) for the vocab-tiled two-pass layout."""
    cands = _k_tile_candidates(d_model)
    if max_k_tile is not None:
        cands = [c for c in cands if c <= max_k_tile] or [min(cands)]
    tk = cands[-1]
    for c in cands:
        if c <= 512:
            tk = c
            break
    for rt in (1024, 512, 256, 128, 64, 32, 16, 8):
        rows_tile = min(rt, max(8, _round_up(rows, 8)))
        fixed = 2 * rows_tile * tk * x_it + 4 * rows_tile * 4 + 4096
        per_col = 2 * tk * w_it + 2 * b_it + 3 * rows_tile * 4   # W dbuf + bias + logits dbuf + acc
        avail = budget - fixed
        if avail < 128 * per_col:
            continue
        tv = min((avail // per_col) // 128 * 128, vocab_p)
        if max_vocab_tile is not None:
            tv = min(tv, max(128, (max_vocab_tile // 128) * 128))
        if tv >= 128:
            return rows_tile, tk, tv
    return 8, cands[-1], 128


# ----------------------------- forward paths ---------------------------------

def _forward_full_vocab(x2, w_t, b2, out_dtype, rows_tile, tk, cap, budget):
    rows, d_model = x2.shape
    vocab_p = w_t.shape[1]

    padded_rows = _round_up(rows, rows_tile)
    if padded_rows != rows:
        x2 = jnp.pad(x2, ((0, padded_rows - rows), (0, 0)))

    nk = d_model // tk
    grid = (padded_rows // rows_tile, nk)

    x_it = x2.dtype.itemsize
    w_it = w_t.dtype.itemsize
    b_it = b2.dtype.itemsize
    out_it = jnp.dtype(out_dtype).itemsize

    est = (2 * rows_tile * tk * x_it + 2 * tk * vocab_p * w_it + 2 * vocab_p * b_it
           + 2 * rows_tile * vocab_p * out_it + rows_tile * vocab_p * 4)
    vmem_limit = int(min(cap, max(budget, est + est // 4)))

    cost = pl.CostEstimate(
        flops=2 * padded_rows * d_model * vocab_p,
        transcendentals=padded_rows * vocab_p,
        bytes_accessed=(padded_rows * d_model * x_it
                        + grid[0] * d_model * vocab_p * w_it   # W re-streamed per row tile
                        + padded_rows * vocab_p * out_it),
    )

    out = pl.pallas_call(
        _gen_full_vocab_kernel,
        out_shape=jax.ShapeDtypeStruct((padded_rows, vocab_p), out_dtype),
        grid_spec=pltpu.PrefetchScalarGridSpec(
            num_scalar_prefetch=0,
            grid=grid,
            in_specs=[
                pl.BlockSpec((rows_tile, tk), _im_x_ik),
                pl.BlockSpec((tk, vocab_p), _im_w_k0),
                pl.BlockSpec((1, vocab_p), _im_b_00),
            ],
            out_specs=pl.BlockSpec((rows_tile, vocab_p), _im_out_i0),
            scratch_shapes=[pltpu.VMEM((rows_tile, vocab_p), jnp.float32)],
        ),
        compiler_params=pltpu.CompilerParams(
            dimension_semantics=("parallel", "arbitrary"),
            vmem_limit_bytes=vmem_limit,
        ),
        cost_estimate=cost,
    )(x2, w_t, b2)

    return out[:rows] if padded_rows != rows else out


def _forward_vocab_tiled(x2, w_t, b2, out_dtype, rows_tile, tk, tv, cap, budget):
    rows, d_model = x2.shape
    vocab_p = w_t.shape[1]

    vocab_p2 = _round_up(vocab_p, tv)
    if vocab_p2 != vocab_p:
        w_t = jnp.pad(w_t, ((0, 0), (0, vocab_p2 - vocab_p)))
        b2 = jnp.pad(b2, ((0, 0), (0, vocab_p2 - vocab_p)), constant_values=_NEG_BIG)
    padded_rows = _round_up(rows, rows_tile)
    if padded_rows != rows:
        x2 = jnp.pad(x2, ((0, padded_rows - rows), (0, 0)))

    nk = d_model // tk
    nj = vocab_p2 // tv
    ni = padded_rows // rows_tile

    x_it = x2.dtype.itemsize
    w_it = w_t.dtype.itemsize
    b_it = b2.dtype.itemsize
    out_it = jnp.dtype(out_dtype).itemsize

    est1 = (2 * rows_tile * tk * x_it + 2 * tk * tv * w_it + 2 * tv * b_it
            + 3 * rows_tile * tv * 4 + 6 * rows_tile * 4)
    vmem_limit1 = int(min(cap, max(budget, est1 + est1 // 4)))
    cost1 = pl.CostEstimate(
        flops=2 * padded_rows * d_model * vocab_p2,
        transcendentals=padded_rows * vocab_p2,
        bytes_accessed=(ni * nj * rows_tile * d_model * x_it
                        + ni * d_model * vocab_p2 * w_it
                        + padded_rows * vocab_p2 * 4),
    )

    logits, lse = pl.pallas_call(
        _gen_logits_lse_kernel,
        out_shape=(jax.ShapeDtypeStruct((padded_rows, vocab_p2), jnp.float32),
                   jax.ShapeDtypeStruct((padded_rows, 1), jnp.float32)),
        grid_spec=pltpu.PrefetchScalarGridSpec(
            num_scalar_prefetch=0,
            grid=(ni, nj, nk),
            in_specs=[
                pl.BlockSpec((rows_tile, tk), _im3_x),
                pl.BlockSpec((tk, tv), _im3_w),
                pl.BlockSpec((1, tv), _im3_b),
            ],
            out_specs=[
                pl.BlockSpec((rows_tile, tv), _im3_logits),
                pl.BlockSpec((rows_tile, 1), _im3_lse),
            ],
            scratch_shapes=[
                pltpu.VMEM((rows_tile, tv), jnp.float32),
                pltpu.VMEM((rows_tile, 1), jnp.float32),
                pltpu.VMEM((rows_tile, 1), jnp.float32),
            ],
        ),
        compiler_params=pltpu.CompilerParams(
            dimension_semantics=("parallel", "arbitrary", "arbitrary"),
            vmem_limit_bytes=vmem_limit1,
        ),
        cost_estimate=cost1,
    )(x2, w_t, b2)

    est2 = 2 * rows_tile * tv * (4 + out_it) + 2 * rows_tile * 4
    vmem_limit2 = int(min(cap, max(budget, est2 + est2 // 4)))
    cost2 = pl.CostEstimate(
        flops=padded_rows * vocab_p2,
        transcendentals=0,
        bytes_accessed=padded_rows * vocab_p2 * (4 + out_it) + padded_rows * 4,
    )

    out = pl.pallas_call(
        _gen_normalize_kernel,
        out_shape=jax.ShapeDtypeStruct((padded_rows, vocab_p2), out_dtype),
        grid_spec=pltpu.PrefetchScalarGridSpec(
            num_scalar_prefetch=0,
            grid=(ni, nj),
            in_specs=[
                pl.BlockSpec((rows_tile, tv), _im2_ij),
                pl.BlockSpec((rows_tile, 1), _im2_i0),
            ],
            out_specs=pl.BlockSpec((rows_tile, tv), _im2_ij),
        ),
        compiler_params=pltpu.CompilerParams(
            dimension_semantics=("parallel", "parallel"),
            vmem_limit_bytes=vmem_limit2,
        ),
        cost_estimate=cost2,
    )(logits, lse)

    if padded_rows != rows or vocab_p2 != vocab_p:
        out = out[:rows, :vocab_p]
    return out


# ------------------------------ public wrapper --------------------------------

def generator_pallas(x, weight, bias, *, rows_tile=None, force_vocab_tiled=False,
                     max_k_tile=None, max_vocab_tile=None):
    """log_softmax(x @ weight.T + bias, axis=-1)   (PyTorch Generator.forward).

    x:      (..., d_model)
    weight: (vocab, d_model)   -- PyTorch nn.Linear layout
    bias:   (vocab,)
    returns (..., vocab), dtype of x.
    """
    d_model = x.shape[-1]
    vocab, d_model_w = weight.shape
    assert d_model_w == d_model
    assert bias.shape == (vocab,)

    orig_lead = x.shape[:-1]
    out_dtype = x.dtype
    x2 = x.reshape(-1, d_model)
    rows = x2.shape[0]

    cap, budget = _vmem_budget_bytes()

    # Lane-dense output: pad vocab to a multiple of 128; padded columns get a very
    # negative bias so they never contribute to the softmax and are sliced off.
    vocab_p = _round_up(vocab, 128)
    if vocab_p != vocab:
        weight = jnp.pad(weight, ((0, vocab_p - vocab), (0, 0)))
        bias = jnp.pad(bias, (0, vocab_p - vocab), constant_values=_NEG_BIG)
    w_t = weight.T                          # (d_model, vocab_p): kernel does x @ w
    b2 = bias.reshape(1, vocab_p)

    x_it = x2.dtype.itemsize
    w_it = w_t.dtype.itemsize
    b_it = b2.dtype.itemsize
    out_it = jnp.dtype(out_dtype).itemsize

    plan = None
    if not force_vocab_tiled:
        plan = _plan_full_vocab(rows, d_model, vocab_p, x_it, w_it, b_it, out_it,
                                budget, max_k_tile)
        if plan is not None and rows_tile is None:
            # Keep vocab resident only if we can reach a useful rows_tile;
            # otherwise use the vocab-tiled two-pass layout (huge vocab / v7x).
            if plan[0] < min(128, max(8, _round_up(rows, 8))):
                plan = None
        if rows_tile is not None:
            tk = plan[1] if plan is not None else _k_tile_candidates(d_model)[-1]
            plan = (max(8, _round_up(int(rows_tile), 8)), tk)

    if plan is not None:
        out = _forward_full_vocab(x2, w_t, b2, out_dtype, plan[0], plan[1],
                                  cap, budget)
    else:
        rt, tk, tv = _plan_vocab_tiled(rows, d_model, vocab_p, x_it, w_it, b_it,
                                       budget, max_k_tile, max_vocab_tile)
        out = _forward_vocab_tiled(x2, w_t, b2, out_dtype, rt, tk, tv, cap, budget)

    if vocab_p != vocab:
        out = out[:, :vocab]
    return out.reshape(orig_lead + (vocab,))


# ---------------------------------- demo --------------------------------------

if __name__ == "__main__":
    key = jax.random.PRNGKey(0)
    k_x, k_w, k_b, k_x2, k_w2, k_b2 = jax.random.split(key, 6)

    # ---- Test 1: full-vocab-resident path (typical small Generator shapes) ----
    batch, seq, d_model, vocab = 2, 8, 32, 128
    x = jax.random.normal(k_x, (batch, seq, d_model), dtype=jnp.float32)
    bound = 1.0 / (d_model ** 0.5)                     # nn.Linear-style init
    weight = jax.random.uniform(k_w, (vocab, d_model), jnp.float32, -bound, bound)
    bias = jax.random.uniform(k_b, (vocab,), jnp.float32, -bound, bound)

    y = jax.block_until_ready(generator_pallas(x, weight, bias))
    ref = jax.nn.log_softmax(x @ weight.T + bias, axis=-1)
    assert y.shape == (batch, seq, vocab) and y.dtype == x.dtype
    assert jnp.allclose(y, ref, atol=1e-5, rtol=1e-5)

    # ---- Test 2: vocab-tiled two-pass path (large-vocab / v7x layout), forced
    #      small so the online-softmax + k-accumulation + padding are exercised ----
    d_model2, vocab2 = 256, 380                        # vocab padded to 384 internally
    x2 = jax.random.normal(k_x2, (batch, seq, d_model2), dtype=jnp.float32)
    weight2 = 0.05 * jax.random.normal(k_w2, (vocab2, d_model2), dtype=jnp.float32)
    bias2 = jax.random.normal(k_b2, (vocab2,), dtype=jnp.float32)

    y2 = jax.block_until_ready(
        generator_pallas(x2, weight2, bias2, force_vocab_tiled=True,
                         max_k_tile=128, max_vocab_tile=128))
    ref2 = jax.nn.log_softmax(x2 @ weight2.T + bias2, axis=-1)
    assert y2.shape == (batch, seq, vocab2) and y2.dtype == x2.dtype
    assert jnp.allclose(y2, ref2, atol=2e-2, rtol=2e-2)

    print("KERNEL_OK")
</pallas_src>

<mosaic_0001>
module attributes {stable_mosaic.version = 11 : i64} {
  func.func @_gen_full_vocab_kernel(%arg0: i32, %arg1: i32, %arg2: memref<16x32xf32, #tpu.memory_space<vmem>>, %arg3: memref<32x128xf32, #tpu.memory_space<vmem>>, %arg4: memref<1x128xf32, #tpu.memory_space<vmem>>, %arg5: memref<16x128xf32, #tpu.memory_space<vmem>>, %arg6: memref<16x128xf32, #tpu.memory_space<vmem>>) attributes {dimension_semantics = [#tpu.dimension_semantics<parallel>, #tpu.dimension_semantics<arbitrary>], iteration_bounds = array<i64: 1, 1>, scalar_prefetch = 0 : i64, scratch_operands = 1 : i64, tpu.core_type = #tpu.core_type<tc>, window_params = [{transform_indices = @transform_0, window_bounds = array<i64: 16, 32>}, {transform_indices = @transform_1, window_bounds = array<i64: 32, 128>}, {pipeline_mode = #tpu.pipeline_mode<synchronous>, transform_indices = @transform_2, window_bounds = array<i64: 1, 128>}, {transform_indices = @transform_3, window_bounds = array<i64: 16, 128>}]} {
    %c0 = arith.constant 0 : index
    %c0_0 = arith.constant 0 : index
    %0 = vector.load %arg2[%c0, %c0_0] : memref<16x32xf32, #tpu.memory_space<vmem>>, vector<16x32xf32>
    %c0_1 = arith.constant 0 : index
    %c0_2 = arith.constant 0 : index
    %1 = vector.load %arg3[%c0_1, %c0_2] : memref<32x128xf32, #tpu.memory_space<vmem>>, vector<32x128xf32>
    %cst = arith.constant dense<0.000000e+00> : vector<16x128xf32>
    %2 = tpu.matmul %0, %1, %cst {dimension_numbers = #tpu.dot_dimension_numbers<[1], [0], [0], [1], [0, 0, 1, 1], [], []>} : vector<16x32xf32>, vector<32x128xf32>, vector<16x128xf32> -> vector<16x128xf32>
    %c0_i32 = arith.constant 0 : i32
    %3 = arith.cmpi eq, %arg1, %c0_i32 : i32
    %4 = arith.extui %3 : i1 to i32
    %c0_i32_3 = arith.constant 0 : i32
    %5 = arith.cmpi ne, %4, %c0_i32_3 : i32
    scf.if %5 {
      %c0_8 = arith.constant 0 : index
      %c0_9 = arith.constant 0 : index
      %12 = vector.load %arg6[%c0_8, %c0_9] : memref<16x128xf32, #tpu.memory_space<vmem>>, vector<16x128xf32>
      tpu.vector_store %arg6[%c0_8, %c0_9], %2 {strides = array<i32>} : memref<16x128xf32, #tpu.memory_space<vmem>>, vector<16x128xf32>,
    } else {
    }
    %c0_i32_4 = arith.constant 0 : i32
    %6 = arith.cmpi sgt, %arg1, %c0_i32_4 : i32
    %7 = arith.extui %6 : i1 to i32
    %c0_i32_5 = arith.constant 0 : i32
    %8 = arith.cmpi ne, %7, %c0_i32_5 : i32
    scf.if %8 {
      %c0_8 = arith.constant 0 : index
      %c0_9 = arith.constant 0 : index
      %12 = vector.load %arg6[%c0_8, %c0_9] : memref<16x128xf32, #tpu.memory_space<vmem>>, vector<16x128xf32>
      %13 = arith.addf %12, %2 : vector<16x128xf32>
      %c0_10 = arith.constant 0 : index
      %c0_11 = arith.constant 0 : index
      %14 = vector.load %arg6[%c0_10, %c0_11] : memref<16x128xf32, #tpu.memory_space<vmem>>, vector<16x128xf32>
      tpu.vector_store %arg6[%c0_10, %c0_11], %13 {strides = array<i32>} : memref<16x128xf32, #tpu.memory_space<vmem>>, vector<16x128xf32>,
    } else {
    }
    %c0_i32_6 = arith.constant 0 : i32
    %9 = arith.cmpi eq, %arg1, %c0_i32_6 : i32
    %10 = arith.extui %9 : i1 to i32
    %c0_i32_7 = arith.constant 0 : i32
    %11 = arith.cmpi ne, %10, %c0_i32_7 : i32
    scf.if %11 {
      %c0_8 = arith.constant 0 : index
      %c0_9 = arith.constant 0 : index
      %12 = vector.load %arg6[%c0_8, %c0_9] : memref<16x128xf32, #tpu.memory_space<vmem>>, vector<16x128xf32>
      %c0_10 = arith.constant 0 : index
      %c0_11 = arith.constant 0 : index
      %13 = vector.load %arg4[%c0_10, %c0_11] : memref<1x128xf32, #tpu.memory_space<vmem>>, vector<1x128xf32>
      %14 = vector.broadcast %13 : vector<1x128xf32> to vector<16x128xf32>
      %15 = arith.addf %12, %14 : vector<16x128xf32>
      %cst_12 = arith.constant dense<0xFF800000> : vector<16xf32>
      %16 = vector.multi_reduction <maximumf>, %15, %cst_12 [1] : vector<16x128xf32> to vector<16xf32>
      %17 = vector.shape_cast %16 : vector<16xf32> to vector<16x1xf32>
      %18 = vector.broadcast %17 : vector<16x1xf32> to vector<16x128xf32>
      %19 = arith.subf %15, %18 : vector<16x128xf32>
      %20 = math.exp %19 : vector<16x128xf32>
      %cst_13 = arith.constant dense<0.000000e+00> : vector<16xf32>
      %21 = vector.multi_reduction <add>, %20, %cst_13 [1] : vector<16x128xf32> to vector<16xf32>
      %22 = vector.shape_cast %21 : vector<16xf32> to vector<16x1xf32>
      %23 = math.log %22 : vector<16x1xf32>
      %24 = arith.addf %17, %23 : vector<16x1xf32>
      %25 = vector.broadcast %24 : vector<16x1xf32> to vector<16x128xf32>
      %26 = arith.subf %15, %25 : vector<16x128xf32>
      %c0_14 = arith.constant 0 : index
      %c0_15 = arith.constant 0 : index
      %27 = vector.load %arg5[%c0_14, %c0_15] : memref<16x128xf32, #tpu.memory_space<vmem>>, vector<16x128xf32>
      tpu.vector_store %arg5[%c0_14, %c0_15], %26 {strides = array<i32>} : memref<16x128xf32, #tpu.memory_space<vmem>>, vector<16x128xf32>,
    } else {
    }
    return
  }
  func.func @transform_0(%arg0: i32, %arg1: i32) -> (i32, i32) {
    %c0_i32 = arith.constant 0 : i32
    return %arg0, %arg1 : i32, i32
  }
  func.func @transform_1(%arg0: i32, %arg1: i32) -> (i32, i32) {
    %c0_i32 = arith.constant 0 : i32
    %c0_i32_0 = arith.constant 0 : i32
    return %arg1, %c0_i32 : i32, i32
  }
  func.func @transform_2(%arg0: i32, %arg1: i32) -> (i32, i32) {
    %c0_i32 = arith.constant 0 : i32
    %c0_i32_0 = arith.constant 0 : i32
    %c0_i32_1 = arith.constant 0 : i32
    return %c0_i32, %c0_i32_0 : i32, i32
  }
  func.func @transform_3(%arg0: i32, %arg1: i32) -> (i32, i32) {
    %c0_i32 = arith.constant 0 : i32
    %c0_i32_0 = arith.constant 0 : i32
    return %arg0, %c0_i32 : i32, i32
  }
}

</mosaic_0001>

<bundles_post_ra>
// kernel: tpu_custom_call.1
= control target key start
LH: loop header
LB: loop body
LE: loop exit
PB: predicated region body
PF: predicated region fallthrough
CT: control target
= control target key end

     0   :  { %8 = vsyncpa [#allocation4], 0  ;;  %s350_s0 = inlined_call_operand.hbm [shape: f32[16,32], index: 0, kind: input, shape index: {}]   ;;  %s351_s1 = inlined_call_operand.hbm [shape: f32[32,128], index: 1, kind: input, shape index: {}]   ;;  %s352_s2 = inlined_call_operand.vmem [shape: f32[1,128], index: 2, kind: input, shape index: {}]   ;;  %s353_s3 = inlined_call_operand.hbm [shape: f32[16,128], index: 3, kind: output, shape index: {}]  }
   0x1   :  { %9 = vsyncpa [#allocation7], 0 }
   0x2   :  { %10 = vsyncpa [#allocation5], 0  ;;  %s302_s12 = smov [#allocation3]  }
   0x3   :  { %s16_s13 = sshll.u32 %s302_s12, 4  ;;  %s17_s13 = int_to_ptr.vmem [resolvable:$true] %s16_s13 }
   0x4   :  { %s244_s14 = scalar_lea.vmem %s17_s13, 256  ;;  %p249_p1 = scmp.lt.s32.totalorder %s17_s13, %s17_s13 }
   0x5   :  { %p245_p0 = scmp.ne.s32.totalorder %s17_s13, %s244_s14  ;;  %p250_p2 = scmp.lt.s32.totalorder %s244_s14, %s244_s14 }
   0x7   :  { %p251_p3 = por %p250_p2, %p249_p1 }
   0x9   :  { %p252_p4 = pnand %p251_p3, %p245_p0 }
   0xb   :  { %255 = shalt.err (!%p252_p4)
}
   0xc   :  { %s303_s15 = smov 128   ;;  %s304_s16 = smov 8  }
   0xd   :  { %22 = dma.hbm_to_vmem [thread:$0]  %s350_s0, 256, %s17_s13, [#allocation4], %s303_s15, %s303_s15, %s304_s16  }
   0xe   :  { %s305_s19 = smov [#allocation6]  }
   0xf   :  { %s28_s20 = sshll.u32 %s305_s19, 4  ;;  %s29_s20 = int_to_ptr.vmem [resolvable:$true] %s28_s20 }
  0x10   :  { %s264_s21 = scalar_lea.vmem %s29_s20, 512  ;;  %p269_p6 = scmp.lt.s32.totalorder %s29_s20, %s29_s20 }
  0x11   :  { %p265_p5 = scmp.ne.s32.totalorder %s29_s20, %s264_s21  ;;  %p270_p7 = scmp.lt.s32.totalorder %s264_s21, %s264_s21 }
  0x13   :  { %p271_p8 = por %p270_p7, %p269_p6 }
  0x15   :  { %p272_p9 = pnand %p271_p8, %p265_p5 }
  0x17   :  { %275 = shalt.err (!%p272_p9)
}
  0x18   :  { %34 = dma.hbm_to_vmem [thread:$0]  %s351_s1, 512, %s29_s20, [#allocation7], %s303_s15, %s303_s15, %s304_s16  }
  0x19   :  { %296 = dma.done.wait [#allocation4], 256  }
  0x1a   :  { %297 = vsyncadd [#allocation4], 4294967040 }
  0x1b   :  { %298 = dma.done.wait [#allocation7], 512  }
  0x1c   :  { %299 = vsyncadd [#allocation7], 4294966784  ;;  %vm49_vm0 = vcmask 261120   ;;  %v48_v0 = vld [vmem:[#allocation6 + $0x18] sm:$0xff]  ;;  %v47_v1 = vld [vmem:[#allocation6 + $0x10] sm:$0xff] }
  0x1d   :  { %212 = vmatprep.subr.mxu0 %v48_v0  ;;  %v43_v2 = vld [vmem:[#allocation3] sm:$0xff]  ;;  %v46_v3 = vld [vmem:[#allocation6 + $0x8] sm:$0xff]  ;;  %v45_v4 = vld [vmem:[#allocation6] sm:$0xff] }
  0x1e   :  { %213 = vmatpush3.msra.mxu0 %v48_v0  ;;  %220 = vmatprep.mubr.msk.f32.mxu0 %vm49_vm0, %v43_v2  ;;  %v44_v5 = vld [vmem:[#allocation3 + $0x8] sm:$0xff]  ;;  %v205_v7 = vld [vmem:[%s352_s2] ss:$0 sm:$0xff]  ;;  %s306_s2 = smov [#allocation8]  }
  0x1f   :  { %214 = vmatprep.subr.mxu0 %v47_v1  ;;  %s190_s24 = sshll.u32 %s306_s2, 4  ;;  %s191_s24 = int_to_ptr.vmem [resolvable:$true] %s190_s24 }
  0x20   :  { %215 = vmatpush3.msra.mxu0 %v47_v1  ;;  %s276_s25 = scalar_lea.vmem %s191_s24, 256  ;;  %p281_p11 = scmp.lt.s32.totalorder %s191_s24, %s191_s24 }
  0x21   :  { %216 = vmatprep.subr.mxu0 %v46_v3  ;;  %p277_p10 = scmp.ne.s32.totalorder %s191_s24, %s276_s25  ;;  %p282_p12 = scmp.lt.s32.totalorder %s276_s25, %s276_s25 }
  0x22   :  { %217 = vmatpush3.msra.mxu0 %v46_v3 }
  0x23   :  { %218 = vmatprep.subr.mxu0 %v45_v4  ;;  %p283_p13 = por %p282_p12, %p281_p11 }
  0x24   :  { %219 = vmatpush3.msra.mxu0 %v45_v4 }
  0x25   :  { %221 = vmatmul.mubr.msk.f32.vlgmr.msra.gmra.mxu0 %vm49_vm0, %v44_v5  ;;  %p284_p0 = pnand %p283_p13, %p277_p10 }
  0xe5   :  { %v222_v6 = vpop.f32.mrf.mxu0 }
  0xe6   :  { %v160_v10 = vadd.f32 %v222_v6, %v205_v7 }
  0xe7   :  { %v122_v8 = vpop.f32.mrf.mxu0 }
  0xe8   :  { %v159_v9 = vadd.f32 %v205_v7, %v122_v8 }
  0xea   :  { %161 = vmax.xlane.f32.xlu0 %v159_v9 }
  0xee   :  { %163 = vmax.xlane.f32.xlu0 %v160_v10 }
 0x173   :  { %v162_v11 = vpop.xlane.xlu0 %161 }
 0x174   :  { %v165_v12 = vsub.f32 %v159_v9, %v162_v11 }
 0x176   :  { %v167_v13 = vmul.f32 1.442695, %v165_v12 }
 0x177   :  { %v164_v14 = vpop.xlane.xlu0 %163 }
 0x178   :  { %228 = vpow2.f32 %v167_v13  ;;  %v166_v15 = vsub.f32 %v160_v10, %v164_v14 }
 0x17a   :  { %v169_v16 = vmul.f32 1.442695, %v166_v15 }
 0x17c   :  { %230 = vpow2.f32 %v169_v16 }
 0x185   :  { %v229_v17 = vpop.eup %228 }
 0x186   :  { %171 = vadd.xlane.f32.xlu1 %v229_v17 }
 0x189   :  { %v231_v18 = vpop.eup %230 }
 0x18a   :  { %173 = vadd.xlane.f32.xlu1 %v231_v18 }
 0x20f   :  { %v172_v19 = vpop.xlane.xlu1 %171 }
 0x210   :  { %232 = vlog2.f32 %v172_v19 }
 0x213   :  { %v174_v20 = vpop.xlane.xlu1 %173 }
 0x214   :  { %234 = vlog2.f32 %v174_v20 }
 0x21d   :  { %v233_v21 = vpop.eup %232 }
 0x21e   :  { %v176_v22 = vmul.f32 0.6931472, %v233_v21 }
 0x220   :  { %v179_v23 = vadd.f32 %v176_v22, %v162_v11 }
 0x221   :  { %v235_v24 = vpop.eup %234 }
 0x222   :  { %v178_v25 = vmul.f32 0.6931472, %v235_v24  ;;  %v181_v26 = vsub.f32 %v159_v9, %v179_v23 }
 0x224   :  { %v180_v27 = vadd.f32 %v178_v25, %v164_v14  ;;  %183 = vst [vmem:[#allocation8] sm:$0xff] %v181_v26 }
 0x226   :  { %v182_v28 = vsub.f32 %v160_v10, %v180_v27 }
 0x228   :  { %184 = vst [vmem:[#allocation8 + $0x8] sm:$0xff] %v182_v28 }
 0x229   :  { %287 = shalt.err (!%p284_p0)
}
 0x22a   :  { %196 = dma.vmem_to_hbm [thread:$0]  %s191_s24, 256, %s353_s3, [#allocation5], %s303_s15, %s303_s15, %s304_s16  }
 0x22b   :  { %300 = dma.done.wait [#allocation5], 256  }
 0x22c   :  { %301 = vsyncadd [#allocation5], 4294967040 }
 0x22d   :  { %200 = vsyncpa [#allocation4], 1 }
 0x22e   :  { %201 = vsyncpa [#allocation7], 1 }
 0x22f   :  { %202 = vsyncpa [#allocation5], 1 }

</bundles_post_ra>
